<compile_context>
chip_gen: v5e
topology: v5e:2x2
jax: 0.10.0
libtpu: 0.0.40
codegen_flags: <defaults>
</compile_context>

<pallas_src>
import jax
import jax.numpy as jnp
from jax.experimental import pallas as pl
from jax.experimental.pallas import tpu as pltpu


_HIDDEN = 40     # hidden units, packed on the sublane axis inside the kernel
_P_LANES = 8     # param field lanes: [w_s0, w_s1, w_a, b1s, b1a, w2, b2, pad]


def _round_up(x, m):
    return ((x + m - 1) // m) * m


def noisy_net_kernel(x_ref, p_ref, out_ref):
    # Noisy-parameter combine W = mu + sigma*eps: one small VPU pass on (40, 8).
    # Recomputed per grid step (cheap) rather than cached in scratch, so it is
    # correct under megacore grid sharding (core 1 never sees program_id == 0).
    pc = p_ref[0] + p_ref[1] * p_ref[2]                       # (40, 8)

    w_s0 = pc[:, 0:1]                                         # (40, 1)
    w_s1 = pc[:, 1:2]                                         # (40, 1)
    w_a = pc[:, 2:3]                                          # (40, 1)
    b1 = pc[:, 3:4] + pc[:, 4:5]                              # fc1_s + fc1_a bias
    w2 = pc[:, 5:6]                                           # (40, 1)
    b2 = pc[0:1, 6:7]                                         # (1, 1) scalar

    x = x_ref[...]                                            # (3, bb): [s0; s1; a]

    # fc1_s(s) + fc1_a(a): K <= 3, outer-product style broadcast FMAs on the VPU.
    # h is (40, bb): hidden on sublanes (packs perfectly), batch on lanes.
    h = (w_s0 * x[0:1, :]
         + w_s1 * x[1:2, :]
         + w_a * x[2:3, :]
         + b1)                                                # (40, bb)
    h = jnp.maximum(h, 0.0)                                   # relu

    # fc2 (N=1): elementwise mul + SUBLANE reduce over the 40 hidden rows
    # -> lane-dense (1, bb) output row (unmasked stores).
    out = jnp.sum(h * w2, axis=0, keepdims=True) + b2         # (1, bb)
    out_ref[...] = out.astype(out_ref.dtype)


def noisy_net_forward(s, a, packed_params, *, max_block=8192):
    """s: (B, 2), a: (B, 1), packed_params: (3, 40, 8) float32 -> (B, 1)."""
    B = s.shape[0]
    # Batch on the lane axis: x_t rows = [s[:,0], s[:,1], a[:,0]].
    x_t = jnp.concatenate([s.T, a.T], axis=0).astype(jnp.float32)   # (3, B)

    if B <= 512:
        bb = B                               # single full-extent block
    else:
        # Lane-dense tiles: multiple of 128, capped, and >= 2 grid steps so both
        # v7x TensorCores get work under dimension_semantics=("parallel",).
        bb = min(max_block,
                 _round_up(pl.cdiv(B, 2), 128),
                 _round_up(B, 128))
    grid = (pl.cdiv(B, bb),)

    out_row = pl.pallas_call(
        noisy_net_kernel,
        out_shape=jax.ShapeDtypeStruct((1, B), jnp.float32),
        grid_spec=pltpu.PrefetchScalarGridSpec(
            num_scalar_prefetch=0,
            grid=grid,
            in_specs=[
                pl.BlockSpec((3, bb), lambda i: (0, i)),
                pl.BlockSpec((3, _HIDDEN, _P_LANES), lambda i: (0, 0, 0)),
            ],
            out_specs=pl.BlockSpec((1, bb), lambda i: (0, i)),
        ),
        compiler_params=pltpu.CompilerParams(
            dimension_semantics=("parallel",),
            vmem_limit_bytes=32 * 1024 * 1024),
    )(x_t, packed_params)

    # Lane-dense (1, B) row -> module's (B, 1) Q-value shape (cheap XLA reshape).
    return out_row.reshape(B, 1)


def make_params(key):
    """Deterministic synthetic NoisyLinear parameters ([mu, sigma, eps] stacks)."""
    def noisy_linear(key, fan_in, fan_out):
        k_mu_w, k_eps_w, k_mu_b, k_eps_b = jax.random.split(key, 4)
        bound = 1.0 / jnp.sqrt(fan_in)
        # stored pre-transposed: (in, out)
        w_mu = jax.random.uniform(k_mu_w, (fan_in, fan_out), jnp.float32,
                                  minval=-bound, maxval=bound)
        w_sigma = jnp.full((fan_in, fan_out), 0.017, jnp.float32)
        w_eps = jax.random.normal(k_eps_w, (fan_in, fan_out), jnp.float32)
        b_mu = jax.random.uniform(k_mu_b, (1, fan_out), jnp.float32,
                                  minval=-bound, maxval=bound)
        b_sigma = jnp.full((1, fan_out), 0.017, jnp.float32)
        b_eps = jax.random.normal(k_eps_b, (1, fan_out), jnp.float32)
        w = jnp.stack([w_mu, w_sigma, w_eps], axis=0)   # (3, in, out)
        b = jnp.stack([b_mu, b_sigma, b_eps], axis=0)   # (3, 1, out)
        return w, b

    k1, k2, k3 = jax.random.split(key, 3)
    w1s, b1s = noisy_linear(k1, 2, 40)
    w1a, b1a = noisy_linear(k2, 1, 40)
    w2, b2 = noisy_linear(k3, 40, 1)
    return {"w1s": w1s, "b1s": b1s, "w1a": w1a, "b1a": b1a,
            "w2": w2, "b2": b2}


def pack_params(p):
    """Pack the 6 [mu, sigma, eps] stacks output-unit-major into (3, 40, 8).

    Lane layout (last axis): 0: w1_s[:,0]  1: w1_s[:,1]  2: w1_a[:,0]
                             3: b1_s       4: b1_a       5: w2
                             6: b2 (broadcast over the 40 rows)  7: zero pad
    """
    w1s = jnp.transpose(p["w1s"], (0, 2, 1))                 # (3, 40, 2)
    w1a = jnp.transpose(p["w1a"], (0, 2, 1))                 # (3, 40, 1)
    b1s = jnp.transpose(p["b1s"], (0, 2, 1))                 # (3, 40, 1)
    b1a = jnp.transpose(p["b1a"], (0, 2, 1))                 # (3, 40, 1)
    w2 = p["w2"]                                             # (3, 40, 1)
    b2 = jnp.broadcast_to(p["b2"], (3, _HIDDEN, 1))          # (3, 40, 1)
    pad = jnp.zeros((3, _HIDDEN, 1), jnp.float32)
    packed = jnp.concatenate([w1s, w1a, b1s, b1a, w2, b2, pad], axis=2)
    assert packed.shape == (3, _HIDDEN, _P_LANES)
    return packed.astype(jnp.float32)


def reference_forward(s, a, p):
    def lin(x, w, b):
        return x @ (w[0] + w[1] * w[2]) + (b[0] + b[1] * b[2])
    h = lin(s, p["w1s"], p["b1s"]) + lin(a, p["w1a"], p["b1a"])
    h = jnp.maximum(h, 0.0)
    return lin(h, p["w2"], p["b2"])


if __name__ == "__main__":
    key = jax.random.PRNGKey(0)
    k_params, k_s, k_a = jax.random.split(key, 3)

    params = make_params(k_params)
    packed = pack_params(params)

    B = 8
    s = jax.random.normal(k_s, (B, 2), jnp.float32)
    a = jax.random.normal(k_a, (B, 1), jnp.float32)

    out = noisy_net_forward(s, a, packed)
    out = jax.block_until_ready(out)

    ref = reference_forward(s, a, params)
    assert out.shape == (B, 1)
    assert jnp.allclose(out, ref, rtol=1e-5, atol=1e-5), (out, ref)

    print("KERNEL_OK")
</pallas_src>

<mosaic_0001>
module attributes {stable_mosaic.version = 11 : i64} {
  func.func @noisy_net_kernel(%arg0: i32, %arg1: memref<3x8xf32, #tpu.memory_space<vmem>>, %arg2: memref<3x40x8xf32, #tpu.memory_space<vmem>>, %arg3: memref<1x8xf32, #tpu.memory_space<vmem>>) attributes {dimension_semantics = [#tpu.dimension_semantics<parallel>], iteration_bounds = array<i64: 1>, scalar_prefetch = 0 : i64, scratch_operands = 0 : i64, tpu.core_type = #tpu.core_type<tc>, window_params = [{transform_indices = @transform_0, window_bounds = array<i64: 3, 8>}, {pipeline_mode = #tpu.pipeline_mode<synchronous>, transform_indices = @transform_1, window_bounds = array<i64: 3, 40, 8>}, {transform_indices = @transform_2, window_bounds = array<i64: 1, 8>}]} {
    %c0 = arith.constant 0 : index
    %c0_0 = arith.constant 0 : index
    %c0_1 = arith.constant 0 : index
    %0 = vector.load %arg2[%c0, %c0_0, %c0_1] : memref<3x40x8xf32, #tpu.memory_space<vmem>>, vector<1x40x8xf32>
    %1 = vector.shape_cast %0 : vector<1x40x8xf32> to vector<40x8xf32>
    %c1 = arith.constant 1 : index
    %c0_2 = arith.constant 0 : index
    %c0_3 = arith.constant 0 : index
    %2 = vector.load %arg2[%c1, %c0_2, %c0_3] : memref<3x40x8xf32, #tpu.memory_space<vmem>>, vector<1x40x8xf32>
    %3 = vector.shape_cast %2 : vector<1x40x8xf32> to vector<40x8xf32>
    %c2 = arith.constant 2 : index
    %c0_4 = arith.constant 0 : index
    %c0_5 = arith.constant 0 : index
    %4 = vector.load %arg2[%c2, %c0_4, %c0_5] : memref<3x40x8xf32, #tpu.memory_space<vmem>>, vector<1x40x8xf32>
    %5 = vector.shape_cast %4 : vector<1x40x8xf32> to vector<40x8xf32>
    %6 = arith.mulf %3, %5 : vector<40x8xf32>
    %7 = arith.addf %1, %6 : vector<40x8xf32>
    %8 = vector.extract_strided_slice %7 {offsets = [0, 0], sizes = [40, 1], strides = [1, 1]} : vector<40x8xf32> to vector<40x1xf32>
    %9 = vector.extract_strided_slice %7 {offsets = [0, 1], sizes = [40, 1], strides = [1, 1]} : vector<40x8xf32> to vector<40x1xf32>
    %10 = vector.extract_strided_slice %7 {offsets = [0, 2], sizes = [40, 1], strides = [1, 1]} : vector<40x8xf32> to vector<40x1xf32>
    %11 = vector.extract_strided_slice %7 {offsets = [0, 3], sizes = [40, 1], strides = [1, 1]} : vector<40x8xf32> to vector<40x1xf32>
    %12 = vector.extract_strided_slice %7 {offsets = [0, 4], sizes = [40, 1], strides = [1, 1]} : vector<40x8xf32> to vector<40x1xf32>
    %13 = arith.addf %11, %12 : vector<40x1xf32>
    %14 = vector.extract_strided_slice %7 {offsets = [0, 5], sizes = [40, 1], strides = [1, 1]} : vector<40x8xf32> to vector<40x1xf32>
    %15 = vector.extract_strided_slice %7 {offsets = [0, 6], sizes = [1, 1], strides = [1, 1]} : vector<40x8xf32> to vector<1x1xf32>
    %c0_6 = arith.constant 0 : index
    %c0_7 = arith.constant 0 : index
    %16 = vector.load %arg1[%c0_6, %c0_7] : memref<3x8xf32, #tpu.memory_space<vmem>>, vector<3x8xf32>
    %17 = vector.extract_strided_slice %16 {offsets = [0, 0], sizes = [1, 8], strides = [1, 1]} : vector<3x8xf32> to vector<1x8xf32>
    %18 = vector.broadcast %8 : vector<40x1xf32> to vector<40x8xf32>
    %19 = vector.broadcast %17 : vector<1x8xf32> to vector<40x8xf32>
    %20 = arith.mulf %18, %19 : vector<40x8xf32>
    %21 = vector.extract_strided_slice %16 {offsets = [1, 0], sizes = [1, 8], strides = [1, 1]} : vector<3x8xf32> to vector<1x8xf32>
    %22 = vector.broadcast %9 : vector<40x1xf32> to vector<40x8xf32>
    %23 = vector.broadcast %21 : vector<1x8xf32> to vector<40x8xf32>
    %24 = arith.mulf %22, %23 : vector<40x8xf32>
    %25 = arith.addf %20, %24 : vector<40x8xf32>
    %26 = vector.extract_strided_slice %16 {offsets = [2, 0], sizes = [1, 8], strides = [1, 1]} : vector<3x8xf32> to vector<1x8xf32>
    %27 = vector.broadcast %10 : vector<40x1xf32> to vector<40x8xf32>
    %28 = vector.broadcast %26 : vector<1x8xf32> to vector<40x8xf32>
    %29 = arith.mulf %27, %28 : vector<40x8xf32>
    %30 = arith.addf %25, %29 : vector<40x8xf32>
    %31 = vector.broadcast %13 : vector<40x1xf32> to vector<40x8xf32>
    %32 = arith.addf %30, %31 : vector<40x8xf32>
    %cst = arith.constant 0.000000e+00 : f32
    %33 = vector.broadcast %cst : f32 to vector<40x8xf32>
    %34 = arith.maximumf %32, %33 : vector<40x8xf32>
    %35 = vector.broadcast %14 : vector<40x1xf32> to vector<40x8xf32>
    %36 = arith.mulf %34, %35 : vector<40x8xf32>
    %cst_8 = arith.constant dense<0.000000e+00> : vector<8xf32>
    %37 = vector.multi_reduction <add>, %36, %cst_8 [0] : vector<40x8xf32> to vector<8xf32>
    %38 = vector.shape_cast %37 : vector<8xf32> to vector<1x8xf32>
    %39 = vector.broadcast %15 : vector<1x1xf32> to vector<1x8xf32>
    %40 = arith.addf %38, %39 : vector<1x8xf32>
    %c0_9 = arith.constant 0 : index
    %c0_10 = arith.constant 0 : index
    %41 = vector.load %arg3[%c0_9, %c0_10] : memref<1x8xf32, #tpu.memory_space<vmem>>, vector<1x8xf32>
    tpu.vector_store %arg3[%c0_9, %c0_10], %40 {strides = array<i32>} : memref<1x8xf32, #tpu.memory_space<vmem>>, vector<1x8xf32>,
    return
  }
  func.func @transform_0(%arg0: i32) -> (i32, i32) {
    %c0_i32 = arith.constant 0 : i32
    %c0_i32_0 = arith.constant 0 : i32
    return %c0_i32, %arg0 : i32, i32
  }
  func.func @transform_1(%arg0: i32) -> (i32, i32, i32) {
    %c0_i32 = arith.constant 0 : i32
    %c0_i32_0 = arith.constant 0 : i32
    %c0_i32_1 = arith.constant 0 : i32
    %c0_i32_2 = arith.constant 0 : i32
    return %c0_i32, %c0_i32_0, %c0_i32_1 : i32, i32, i32
  }
  func.func @transform_2(%arg0: i32) -> (i32, i32) {
    %c0_i32 = arith.constant 0 : i32
    %c0_i32_0 = arith.constant 0 : i32
    return %c0_i32, %arg0 : i32, i32
  }
}

</mosaic_0001>

<bundles_post_ra>
// kernel: tpu_custom_call.1
= control target key start
LH: loop header
LB: loop body
LE: loop exit
PB: predicated region body
PF: predicated region fallthrough
CT: control target
= control target key end

     0   :  { %v315_v7 = vmov 0   ;;  %s316_s7 = smov 127   ;;  %s411_s0 = inlined_call_operand.vmem [shape: f32[3,8], index: 0, kind: input, shape index: {}]   ;;  %s412_s1 = inlined_call_operand.vmem [shape: f32[3,40,8], index: 1, kind: input, shape index: {}]   ;;  %s413_s2 = inlined_call_operand.hbm [shape: f32[1,8], index: 2, kind: output, shape index: {}]  }
   0x1   :  { %v14_v0 = vld [vmem:[%s412_s1 + $0x10] sm:$0xff]  ;;  %v254_v1 = vld [vmem:[%s412_s1 + $0x38] sm:$0xff]  ;;  %v259_v2 = vld [vmem:[%s412_s1 + $0x60] sm:$0xff]  ;;  %272 = vset.pattern.permute.xlu1 %v315_v7  ;;  %270 = vset.pattern.permute.xlu2 %v315_v7 }
   0x2   :  { %v31_v3 = vmul.f32 %v259_v2, %v254_v1  ;;  %v12_v4 = vld [vmem:[%s412_s1] sm:$0xff]  ;;  %v252_v5 = vld [vmem:[%s412_s1 + $0x28] sm:$0xff]  ;;  %v257_v6 = vld [vmem:[%s412_s1 + $0x50] sm:$0xff]  ;;  %271 = vset.pattern.permute.xlu0 %v315_v7 }
   0x3   :  { %v29_v8 = vmul.f32 %v257_v6, %v252_v5  ;;  %v255_v9 = vld [vmem:[%s412_s1 + $0x40] sm:$0xff]  ;;  %v260_v10 = vld [vmem:[%s412_s1 + $0x68] sm:$0xff]  ;;  %v253_v12 = vld [vmem:[%s412_s1 + $0x30] sm:$0xff] }
   0x4   :  { %v362_v11 = vadd.f32 %v31_v3, %v14_v0  ;;  %v258_v13 = vld [vmem:[%s412_s1 + $0x58] sm:$0xff]  ;;  %v16_v15 = vld [vmem:[%s412_s1 + $0x20] sm:$0xff]  ;;  %v256_v16 = vld [vmem:[%s412_s1 + $0x48] sm:$0xff]  ;;  %v32_v18 = vmul.f32 %v260_v10, %v255_v9 }
   0x5   :  { %v370_v14 = vadd.f32 %v29_v8, %v12_v4  ;;  %v261_v17 = vld [vmem:[%s412_s1 + $0x70] sm:$0xff] }
   0x6   :  { %48 = vrot.lane.b32.xlu1 %v362_v11, %s316_s7  ;;  %v33_v19 = vmul.f32 %v261_v17, %v256_v16 }
   0x7   :  { %7 = vsyncpa [#allocation3], 0  ;;  %44 = vrot.lane.b32.xlu0 %v370_v14, %s316_s7  ;;  %v15_v20 = vld [vmem:[%s412_s1 + $0x18] sm:$0xff]  ;;  %v30_v21 = vmul.f32 %v258_v13, %v253_v12  ;;  %v13_v22 = vld [vmem:[%s412_s1 + $0x8] sm:$0xff]  ;;  %v317_v26 = vmov 1   ;;  %v318_v27 = vmov 2  }
   0x8   :  { %v38_v23 = vadd.f32 %v33_v19, %v16_v15  ;;  %v37_v24 = vadd.f32 %v32_v18, %v15_v20  ;;  %v319_v28 = vmov 5   ;;  %v320_v29 = vmov 3   ;;  %v64_v53 = vld [vmem:[%s411_s0] sm:$0x7]  ;;  %s322_s0 = smov [#allocation2]   ;;  %s243_s16 = sshll.u32 %s413_s2, 4  ;;  %s244_s16 = int_to_ptr.hbm [resolvable:$true] %s243_s16 }
   0x9   :  { %v35_v25 = vadd.f32 %v30_v21, %v13_v22  ;;  %v321_v40 = vmov 6   ;;  %v85_v57 = vperm.slane %v64_v53, 0  ;;  %v111_v58 = vperm.slane %v64_v53, 1  ;;  %s241_s13 = sshll.u32 %s322_s0, 4  ;;  %s242_s13 = int_to_ptr.vmem [resolvable:$true] %s241_s13 }
   0xa   :  { %52 = vrot.lane.b32.xlu2 %v38_v23, %s316_s7  ;;  %v142_v61 = vperm.slane %v64_v53, 2  ;;  %vm213_vm0 = vcmask 64512   ;;  %vm234_vm1 = vcmask 57344  }
   0xe   :  { %50 = vrot.lane.b32.xlu1 %v37_v24, %s316_s7 }
   0xf   :  { %46 = vrot.lane.b32.xlu0 %v35_v25, %s316_s7 }
  0x12   :  { %66 = vperm.xlu2 %270, %v370_v14  }
  0x16   :  { %74 = vperm.xlu1 %272, %v362_v11  }
  0x17   :  { %70 = vperm.xlu0 %271, %v35_v25  }
  0x1a   :  { %78 = vperm.xlu2 %270, %v37_v24  }
  0x1e   :  { %82 = vperm.xlu1 %272, %v38_v23  }
  0x1f   :  { %274 = vset.pattern.permute.xlu0 %v317_v26 }
  0x20   :  { %96 = vperm.xlu0 %274, %v35_v25  }
  0x22   :  { %273 = vset.pattern.permute.xlu2 %v317_v26 }
  0x23   :  { %92 = vperm.xlu2 %273, %v370_v14  }
  0x26   :  { %275 = vset.pattern.permute.xlu1 %v317_v26 }
  0x27   :  { %100 = vperm.xlu1 %275, %v362_v11  }
  0x28   :  { %277 = vset.pattern.permute.xlu0 %v318_v27 }
  0x29   :  { %127 = vperm.xlu0 %277, %v35_v25  }
  0x2b   :  { %104 = vperm.xlu2 %273, %v37_v24  }
  0x2f   :  { %108 = vperm.xlu1 %275, %v38_v23  }
  0x31   :  { %282 = vset.pattern.permute.xlu0 %v320_v29 }
  0x33   :  { %276 = vset.pattern.permute.xlu2 %v318_v27 }
  0x34   :  { %123 = vperm.xlu2 %276, %v370_v14  }
  0x37   :  { %278 = vset.pattern.permute.xlu1 %v318_v27 }
  0x38   :  { %131 = vperm.xlu1 %278, %v362_v11  }
  0x3c   :  { %135 = vperm.xlu2 %276, %v37_v24  }
  0x40   :  { %139 = vperm.xlu1 %278, %v38_v23  }
  0x44   :  { %280 = vset.pattern.permute.xlu2 %v319_v28 }
  0x45   :  { %193 = vperm.xlu2 %280, %v35_v25  }
  0x48   :  { %279 = vset.pattern.permute.xlu1 %v319_v28 }
  0x49   :  { %189 = vperm.xlu1 %279, %v370_v14  }
  0x4d   :  { %281 = vset.pattern.permute.xlu2 %v320_v29 }
  0x51   :  { %283 = vset.pattern.permute.xlu1 %v320_v29 }
  0x64   :  { %v53_v38 = vpop.permute.xlu2 %52 }
  0x65   :  { %v63_v39 = vadd.f32 %v53_v38, %v38_v23 }
  0x6c   :  { %v67_v41 = vpop.permute.xlu2 %66 }
  0x6d   :  { %v86_v59 = vmul.f32 %v85_v57, %v67_v41 }
  0x74   :  { %v79_v43 = vpop.permute.xlu2 %78 }
  0x75   :  { %v89_v10 = vmul.f32 %v85_v57, %v79_v43 }
  0x78   :  { %v49_v30 = vpop.permute.xlu1 %48 }
  0x79   :  { %v61_v31 = vadd.f32 %v49_v30, %v362_v11  ;;  %v45_v32 = vpop.permute.xlu0 %44 }
  0x7a   :  { %v59_v33 = vadd.f32 %v45_v32, %v370_v14 }
  0x7b   :  { %165 = vperm.xlu1 %283, %v61_v31  }
  0x7c   :  { %155 = vperm.xlu2 %281, %v59_v33  }
  0x7d   :  { %v93_v45 = vpop.permute.xlu2 %92 }
  0x7e   :  { %v112_v60 = vmul.f32 %v111_v58, %v93_v45 }
  0x80   :  { %v51_v34 = vpop.permute.xlu1 %50  ;;  %v117_v2 = vadd.f32 %v112_v60, %v86_v59 }
  0x81   :  { %v62_v35 = vadd.f32 %v51_v34, %v37_v24  ;;  %v47_v36 = vpop.permute.xlu0 %46 }
  0x82   :  { %v60_v37 = vadd.f32 %v47_v36, %v35_v25 }
  0x83   :  { %284 = vset.pattern.permute.xlu1 %v319_v28 }
  0x84   :  { %170 = vperm.xlu2 %281, %v62_v35   ;;  %160 = vperm.xlu0 %282, %v60_v37  }
  0x85   :  { %197 = vperm.xlu1 %284, %v362_v11   ;;  %v105_v47 = vpop.permute.xlu2 %104 }
  0x86   :  { %v115_v11 = vmul.f32 %v111_v58, %v105_v47 }
  0x88   :  { %v75_v42 = vpop.permute.xlu1 %74  ;;  %v120_v19 = vadd.f32 %v115_v11, %v89_v10 }
  0x89   :  { %v71_v51 = vpop.permute.xlu0 %70  ;;  %v88_v5 = vmul.f32 %v85_v57, %v75_v42 }
  0x8a   :  { %v87_v63 = vmul.f32 %v85_v57, %v71_v51 }
  0x8c   :  { %285 = vset.pattern.permute.xlu2 %v319_v28  ;;  %175 = vperm.xlu0 %282, %v63_v39  }
  0x8d   :  { %201 = vperm.xlu2 %285, %v37_v24   ;;  %287 = vset.pattern.permute.xlu1 %v321_v40 }
  0x8e   :  { %230 = vperm.xlu1 %287, %v370_v14   ;;  %v124_v49 = vpop.permute.xlu2 %123 }
  0x8f   :  { %v143_v3 = vmul.f32 %v142_v61, %v124_v49 }
  0x90   :  { %v83_v44 = vpop.permute.xlu1 %82 }
  0x91   :  { %v148_v9 = vadd.f32 %v143_v3, %v117_v2  ;;  %v90_v18 = vmul.f32 %v85_v57, %v83_v44 }
  0x92   :  { %v97_v56 = vpop.permute.xlu0 %96 }
  0x93   :  { %v113_v0 = vmul.f32 %v111_v58, %v97_v56 }
  0x94   :  { %286 = vset.pattern.permute.xlu0 %v319_v28 }
  0x95   :  { %205 = vperm.xlu0 %286, %v38_v23   ;;  %v118_v7 = vadd.f32 %v113_v0, %v87_v63 }
  0x96   :  { %v136_v52 = vpop.permute.xlu2 %135 }
  0x97   :  { %v146_v23 = vmul.f32 %v142_v61, %v136_v52 }
  0x99   :  { %v101_v46 = vpop.permute.xlu1 %100  ;;  %v151_v32 = vadd.f32 %v146_v23, %v120_v19 }
  0x9a   :  { %v114_v6 = vmul.f32 %v111_v58, %v101_v46 }
  0x9b   :  { %v128_v4 = vpop.permute.xlu0 %127 }
  0x9c   :  { %v144_v8 = vmul.f32 %v142_v61, %v128_v4  ;;  %v119_v13 = vadd.f32 %v114_v6, %v88_v5 }
  0x9d   :  { %288 = vset.pattern.permute.xlu0 %v321_v40 }
  0x9e   :  { %v149_v16 = vadd.f32 %v144_v8, %v118_v7 }
  0x9f   :  { %v194_v55 = vpop.permute.xlu2 %193 }
  0xa1   :  { %v109_v48 = vpop.permute.xlu1 %108 }
  0xa2   :  { %v116_v22 = vmul.f32 %v111_v58, %v109_v48 }
  0xa4   :  { %v121_v29 = vadd.f32 %v116_v22, %v90_v18 }
  0xaa   :  { %v132_v50 = vpop.permute.xlu1 %131 }
  0xab   :  { %v145_v14 = vmul.f32 %v142_v61, %v132_v50 }
  0xad   :  { %v150_v25 = vadd.f32 %v145_v14, %v119_v13 }
  0xb2   :  { %v140_v54 = vpop.permute.xlu1 %139 }
  0xb3   :  { %v147_v30 = vmul.f32 %v142_v61, %v140_v54 }
  0xb5   :  { %v152_v40 = vadd.f32 %v147_v30, %v121_v29 }
  0xbb   :  { %v190_v62 = vpop.permute.xlu1 %189 }
  0xd6   :  { %v156_v1 = vpop.permute.xlu2 %155 }
  0xd7   :  { %v178_v15 = vadd.f32 %v156_v1, %v148_v9 }
  0xd9   :  { %v183_v24 = vmax.f32 %v178_v15, 0.0 }
  0xdb   :  { %v208_v31 = vmul.f32 %v190_v62, %v183_v24 }
  0xdd   :  { %v214_v38 = vsel %vm213_vm0, %v208_v31, 0.0 }
  0xde   :  { %v171_v20 = vpop.permute.xlu2 %170 }
  0xdf   :  { %v181_v34 = vadd.f32 %v171_v20, %v151_v32 }
  0xe1   :  { %v186_v43 = vmax.f32 %v181_v34, 0.0 }
  0xe7   :  { %v202_v41 = vpop.permute.xlu2 %201 }
  0xe8   :  { %v211_v45 = vmul.f32 %v202_v41, %v186_v43 }
  0xea   :  { %v219_v50 = vsel %vm213_vm0, %v211_v45, 0.0 }
  0xed   :  { %v166_v12 = vpop.permute.xlu1 %165 }
  0xee   :  { %v180_v27 = vadd.f32 %v166_v12, %v150_v25 }
  0xf0   :  { %v185_v35 = vmax.f32 %v180_v27, 0.0 }
  0xf6   :  { %v161_v17 = vpop.permute.xlu0 %160 }
  0xf7   :  { %v179_v21 = vadd.f32 %v161_v17, %v149_v16  ;;  %v198_v33 = vpop.permute.xlu1 %197 }
  0xf8   :  { %v210_v39 = vmul.f32 %v198_v33, %v185_v35 }
  0xf9   :  { %v184_v26 = vmax.f32 %v179_v21, 0.0 }
  0xfa   :  { %v217_v46 = vsel %vm213_vm0, %v210_v39, 0.0 }
  0xfb   :  { %v209_v28 = vmul.f32 %v194_v55, %v184_v26 }
  0xfd   :  { %v215_v36 = vsel %vm213_vm0, %v209_v28, 0.0 }
  0xfe   :  { %v176_v37 = vpop.permute.xlu0 %175  ;;  %v216_v42 = vadd.f32 %v215_v36, %v214_v38 }
  0xff   :  { %v182_v44 = vadd.f32 %v176_v37, %v152_v40 }
 0x100   :  { %v218_v47 = vadd.f32 %v217_v46, %v216_v42  ;;  %v231_v60 = vpop.permute.xlu1 %230 }
 0x101   :  { %v187_v48 = vmax.f32 %v182_v44, 0.0 }
 0x102   :  { %v220_v52 = vadd.f32 %v219_v50, %v218_v47 }
 0x107   :  { %v206_v49 = vpop.permute.xlu0 %205 }
 0x108   :  { %v212_v51 = vmul.f32 %v206_v49, %v187_v48 }
 0x10a   :  { %v221_v53 = vsel %vm213_vm0, %v212_v51, 0.0 }
 0x10b   :  { %v222_v54 = vadd.f32 %v221_v53, %v220_v52 }
 0x10d   :  { %v223_v55 = vrot.slane %v222_v54, 4 }
 0x10f   :  { %v224_v56 = vadd.f32 %v223_v55, %v222_v54 }
 0x111   :  { %v225_v57 = vrot.slane %v224_v56, 2 }
 0x113   :  { %v226_v58 = vadd.f32 %v225_v57, %v224_v56 }
 0x115   :  { %v227_v59 = vrot.slane %v226_v58, 1 }
 0x117   :  { %v228_v61 = vadd.f32 %v227_v59, %v226_v58 }
 0x119   :  { %v233_v62 = vadd.f32 %v231_v60, %v228_v61 }
 0x11b   :  { %235 = vst.msk [vmem:[#allocation2] sm:$0x1] %vm234_vm1, %v233_v62 }
 0x11c   :  { %246 = dma.vmem_to_hbm [thread:$0]  %s242_s13, 16, %s244_s16, [#allocation3]  }
 0x11d   :  { %313 = dma.done.wait [#allocation3], 16  }
 0x11e   :  { %314 = vsyncadd [#allocation3], 4294967280 }
 0x11f   :  { %251 = vsyncpa [#allocation3], 1 }

</bundles_post_ra>
